<compile_context>
chip_gen: v5e
topology: v5e:2x2
jax: 0.10.0
libtpu: 0.0.40
codegen_flags: <defaults>
</compile_context>

<pallas_src>
import functools
import math

import jax
import jax.numpy as jnp
from jax.experimental import pallas as pl
from jax.experimental.pallas import tpu as pltpu


def _round_up(n, m):
    return ((n + m - 1) // m) * m


# ---------------------------------------------------------------------------
# Activations
# ---------------------------------------------------------------------------
def _act_kernel(name, h):
    if name == "relu":
        return jnp.maximum(h, 0.0)          # stays in the f32 accumulator dtype
    if name == "gelu":
        # tanh-approx gelu: lowers to EUP ops that overlap with the MXU pushes.
        # (PyTorch F.gelu default is the exact erf form; max deviation ~1e-3.)
        # TODO(synk): exact erf gelu if bit-exact parity with PyTorch is required.
        return jax.nn.gelu(h, approximate=True)
    # TODO(synk): glu activation (dim-halving) not implemented.
    raise RuntimeError(f"activation should be relu/gelu, not {name}.")


def _act_ref(name, h):
    if name == "relu":
        return jnp.maximum(h, 0.0)
    if name == "gelu":
        return jax.nn.gelu(h, approximate=False)      # PyTorch F.gelu default
    raise RuntimeError(f"activation should be relu/gelu, not {name}.")


# ---------------------------------------------------------------------------
# LayerNorm kernel (standalone, used for self_norm / cross_norm applications)
# ---------------------------------------------------------------------------
def _ln_kernel(x_ref, g_ref, b_ref, o_ref, *, eps):
    x = x_ref[...].astype(jnp.float32)
    mu = jnp.mean(x, axis=-1, keepdims=True)
    var = jnp.mean(jnp.square(x - mu), axis=-1, keepdims=True)
    y = (x - mu) * jax.lax.rsqrt(var + eps) * g_ref[...].astype(jnp.float32) \
        + b_ref[...].astype(jnp.float32)
    o_ref[...] = y.astype(o_ref.dtype)


def layer_norm(x, gamma, beta, *, eps=1e-5, block_rows=256):
    B, S, E = x.shape
    N = B * S
    tm = min(block_rows, _round_up(N, 8))
    Np = _round_up(N, tm)
    x2d = x.reshape(N, E)
    xp = x2d if Np == N else jnp.zeros((Np, E), x2d.dtype).at[:N].set(x2d)

    out = pl.pallas_call(
        functools.partial(_ln_kernel, eps=eps),
        out_shape=jax.ShapeDtypeStruct((Np, E), x.dtype),
        grid=(Np // tm,),
        in_specs=[
            pl.BlockSpec((tm, E), lambda i: (i, 0)),
            pl.BlockSpec((1, E), lambda i: (0, 0)),
            pl.BlockSpec((1, E), lambda i: (0, 0)),
        ],
        out_specs=pl.BlockSpec((tm, E), lambda i: (i, 0)),
        compiler_params=pltpu.CompilerParams(dimension_semantics=("parallel",)),
    )(xp, gamma.reshape(1, E), beta.reshape(1, E))
    return out[:N].reshape(B, S, E)


# ---------------------------------------------------------------------------
# Linear kernel (row-tiled x @ W + b), used for attention projections
# ---------------------------------------------------------------------------
def _linear_kernel(x_ref, w_ref, b_ref, o_ref):
    y = jnp.dot(x_ref[...], w_ref[...], preferred_element_type=jnp.float32)
    o_ref[...] = (y + b_ref[...].astype(jnp.float32)).astype(o_ref.dtype)


def _linear(x2d, w, b, *, block_rows=256):
    N, Din = x2d.shape
    Dout = w.shape[1]
    tm = min(block_rows, _round_up(N, 8))
    Np = _round_up(N, tm)
    xp = x2d if Np == N else jnp.zeros((Np, Din), x2d.dtype).at[:N].set(x2d)

    out = pl.pallas_call(
        _linear_kernel,
        out_shape=jax.ShapeDtypeStruct((Np, Dout), x2d.dtype),
        grid=(Np // tm,),
        in_specs=[
            pl.BlockSpec((tm, Din), lambda i: (i, 0)),
            pl.BlockSpec((Din, Dout), lambda i: (0, 0)),
            pl.BlockSpec((1, Dout), lambda i: (0, 0)),
        ],
        out_specs=pl.BlockSpec((tm, Dout), lambda i: (i, 0)),
        compiler_params=pltpu.CompilerParams(dimension_semantics=("parallel",)),
    )(xp, w, b.reshape(1, Dout))
    return out[:N]


# ---------------------------------------------------------------------------
# Attention core kernel: one (batch, head) per grid step
# ---------------------------------------------------------------------------
def _attn_core_kernel(q_ref, kt_ref, v_ref, m_ref, o_ref, *, scale):
    # q: (Sq, Dh), kt: (Dh, Skv), v: (Skv, Dh), m: additive mask (Sq, Skv)
    s = jnp.dot(q_ref[...], kt_ref[...], preferred_element_type=jnp.float32) * scale
    s = s + m_ref[...]
    m = jnp.max(s, axis=-1, keepdims=True)
    p = jnp.exp(s - m)
    p = p / jnp.sum(p, axis=-1, keepdims=True)
    # dropout_attn == identity (eval mode)
    ctx = jnp.dot(p.astype(v_ref.dtype), v_ref[...], preferred_element_type=jnp.float32)
    o_ref[...] = ctx.astype(o_ref.dtype)
    # TODO(synk): flash-style streaming over Skv for long sequences.


def multi_head_attention(x_q, x_kv, p, *, num_heads, mask=None, block_rows=256):
    B, Sq, E = x_q.shape
    Skv = x_kv.shape[1]
    assert E % num_heads == 0
    Dh = E // num_heads
    scale = 1.0 / math.sqrt(Dh)

    q = _linear(x_q.reshape(-1, E), p["wq"], p["bq"], block_rows=block_rows)
    k = _linear(x_kv.reshape(-1, E), p["wk"], p["bk"], block_rows=block_rows)
    v = _linear(x_kv.reshape(-1, E), p["wv"], p["bv"], block_rows=block_rows)

    def split_heads(t, S):
        return (t.reshape(B, S, num_heads, Dh)
                 .transpose(0, 2, 1, 3)
                 .reshape(B * num_heads, S, Dh))

    qh = split_heads(q, Sq).astype(jnp.float32)
    kh = split_heads(k, Skv).astype(jnp.float32)
    vh = split_heads(v, Skv).astype(jnp.float32)
    kth = jnp.swapaxes(kh, 1, 2)                       # (B*H, Dh, Skv)

    if mask is None:
        mask = jnp.zeros((Sq, Skv), jnp.float32)
    mask = mask.astype(jnp.float32)

    ctx = pl.pallas_call(
        functools.partial(_attn_core_kernel, scale=scale),
        out_shape=jax.ShapeDtypeStruct((B * num_heads, Sq, Dh), jnp.float32),
        grid=(B * num_heads,),
        in_specs=[
            pl.BlockSpec((None, Sq, Dh), lambda i: (i, 0, 0)),
            pl.BlockSpec((None, Dh, Skv), lambda i: (i, 0, 0)),
            pl.BlockSpec((None, Skv, Dh), lambda i: (i, 0, 0)),
            pl.BlockSpec((Sq, Skv), lambda i: (0, 0)),
        ],
        out_specs=pl.BlockSpec((None, Sq, Dh), lambda i: (i, 0, 0)),
        compiler_params=pltpu.CompilerParams(dimension_semantics=("parallel",)),
    )(qh, kth, vh, mask)

    ctx = (ctx.reshape(B, num_heads, Sq, Dh)
              .transpose(0, 2, 1, 3)
              .reshape(B * Sq, E))
    out = _linear(ctx, p["wo"], p["bo"], block_rows=block_rows)
    return out.reshape(B, Sq, E).astype(x_q.dtype)


# ---------------------------------------------------------------------------
# Fused FFN kernel: LN + linear1 + act + linear2 + residual (+ post-LN)
# grid = (row tiles, F chunks); the F axis accumulates into a VMEM f32 scratch.
# ---------------------------------------------------------------------------
def _ffn_kernel(x_ref, g_ref, bta_ref, w1_ref, b1_ref, w2_ref, b2_ref,
                o_ref, u_ref, acc_ref, *, norm_first, activation, eps, e_true):
    j = pl.program_id(1)
    nj = pl.num_programs(1)
    inv_e = 1.0 / e_true

    def layer_norm_f32(v):
        # Sum-based statistics over the *true* embed dim so the zero padding
        # (E rounded up to a multiple of 128 for lane-dense stores) does not
        # perturb mean/var; padded gamma/beta are zero -> padded lanes stay 0.
        mu = jnp.sum(v, axis=-1, keepdims=True) * inv_e
        var = jnp.sum(v * v, axis=-1, keepdims=True) * inv_e - mu * mu
        g = g_ref[...].astype(jnp.float32)     # read once (broadcasts aren't CSE'd)
        b = bta_ref[...].astype(jnp.float32)
        return (v - mu) * jax.lax.rsqrt(var + eps) * g + b

    @pl.when(j == 0)
    def _init():
        x = x_ref[...].astype(jnp.float32)
        u = layer_norm_f32(x) if norm_first else x
        u_ref[...] = u.astype(u_ref.dtype)     # bf16 MXU operand, reused for every F chunk
        acc_ref[...] = jnp.zeros_like(acc_ref)

    # F chunk j:  h = act(u @ W1[:, j] + b1[j]);  acc += h @ W2[j, :]
    h = jnp.dot(u_ref[...], w1_ref[...], preferred_element_type=jnp.float32)
    h = _act_kernel(activation, h + b1_ref[...].astype(jnp.float32))
    # dropout == identity in eval mode
    acc_ref[...] += jnp.dot(h.astype(w2_ref.dtype), w2_ref[...],
                            preferred_element_type=jnp.float32)

    @pl.when(j == nj - 1)
    def _finalize():
        x = x_ref[...].astype(jnp.float32)
        y = acc_ref[...] + b2_ref[...].astype(jnp.float32)
        out = x + y if norm_first else layer_norm_f32(x + y)
        o_ref[...] = out.astype(o_ref.dtype)


def fully_connected_network(x, params, *, norm_first, activation="gelu", eps=1e-5,
                            block_rows=None, f_block=2048,
                            matmul_dtype=jnp.bfloat16):
    """x: (B, S, E). params: gamma, beta, w1 (E,F), b1 (F,), w2 (F,E), b2 (E,)."""
    B, S, E = x.shape
    F_dim = params["w1"].shape[1]
    N = B * S
    f32 = jnp.float32

    # ---- tiling: lane-dense padding + big row tiles + streamed hidden dim ----
    Ep = _round_up(E, 128)
    Fp = _round_up(F_dim, 128)
    tf = min(Fp, f_block)
    Fp = _round_up(Fp, tf)
    nj = Fp // tf
    if block_rows is None:
        # >=256 rows keeps the MXU M dimension full (v5e 128 / v6e,v7x 256);
        # tiny problems use one padded tile. At realistic N this also leaves
        # N//tm >= 2 so both v7x TensorCores get work.
        tm = 256 if N >= 256 else _round_up(N, 8)
    else:
        tm = block_rows
    Np = _round_up(N, tm)
    ni = Np // tm

    xp = jnp.zeros((Np, Ep), f32).at[:N, :E].set(x.reshape(N, E).astype(f32))
    gp = jnp.zeros((1, Ep), f32).at[0, :E].set(params["gamma"].astype(f32))
    btp = jnp.zeros((1, Ep), f32).at[0, :E].set(params["beta"].astype(f32))
    w1p = jnp.zeros((Ep, Fp), matmul_dtype).at[:E, :F_dim].set(
        params["w1"].astype(matmul_dtype))
    b1p = jnp.zeros((1, Fp), f32).at[0, :F_dim].set(params["b1"].astype(f32))
    w2p = jnp.zeros((Fp, Ep), matmul_dtype).at[:F_dim, :E].set(
        params["w2"].astype(matmul_dtype))
    b2p = jnp.zeros((1, Ep), f32).at[0, :E].set(params["b2"].astype(f32))

    kernel = functools.partial(_ffn_kernel, norm_first=norm_first,
                               activation=activation, eps=eps, e_true=float(E))

    # ---- explicit VMEM budget for this tiling (kept <= 64 MiB for v7x) ----
    wbytes = jnp.dtype(matmul_dtype).itemsize
    vmem_est = (2 * 2 * tm * Ep * 4                    # x + out tiles, double buffered
                + 2 * (Ep * tf + tf * Ep) * wbytes     # w1 + w2 chunks
                + 2 * (tf + 3 * Ep) * 4                # biases / gamma / beta
                + tm * Ep * (2 + 4)                    # u (bf16) + acc (f32) scratch
                + tm * tf * 4)                         # (tm, tf) hidden intermediate
    vmem_limit = int(min(max(2 * vmem_est, 16 * 1024 * 1024), 64 * 1024 * 1024))

    cost = pl.CostEstimate(
        flops=4 * N * E * F_dim,                                     # two matmuls
        transcendentals=(N * F_dim if activation == "gelu" else 0),
        bytes_accessed=2 * N * E * 4 + 2 * E * F_dim * wbytes + (F_dim + 3 * E) * 4)

    def build_call(single_buffer_consts):
        def spec(shape, index_map, constant):
            # Constant-index blocks do not need double buffering: one VMEM
            # buffer, fetched once -> halves weight VMEM residency.
            if constant and single_buffer_consts:
                return pl.BlockSpec(shape, index_map, pipeline_mode=pl.Buffered(1))
            return pl.BlockSpec(shape, index_map)

        w_const = (nj == 1)   # weights constant across the grid iff F fits one tile
        in_specs = [
            pl.BlockSpec((tm, Ep), lambda i, j: (i, 0)),      # x tile
            spec((1, Ep), lambda i, j: (0, 0), True),         # gamma
            spec((1, Ep), lambda i, j: (0, 0), True),         # beta
            spec((Ep, tf), lambda i, j: (0, j), w_const),     # w1 chunk
            spec((1, tf), lambda i, j: (0, j), w_const),      # b1 chunk
            spec((tf, Ep), lambda i, j: (j, 0), w_const),     # w2 chunk
            spec((1, Ep), lambda i, j: (0, 0), True),         # b2
        ]
        return pl.pallas_call(
            kernel,
            out_shape=jax.ShapeDtypeStruct((Np, Ep), x.dtype),
            grid=(ni, nj),
            in_specs=in_specs,
            out_specs=pl.BlockSpec((tm, Ep), lambda i, j: (i, 0)),
            scratch_shapes=[pltpu.VMEM((tm, Ep), matmul_dtype),   # normalized input
                            pltpu.VMEM((tm, Ep), jnp.float32)],   # f32 accumulator
            compiler_params=pltpu.CompilerParams(
                dimension_semantics=("parallel", "arbitrary"),
                vmem_limit_bytes=vmem_limit),
            cost_estimate=cost,
        )

    args = (xp, gp, btp, w1p, b1p, w2p, b2p)
    try:
        outp = build_call(True)(*args)
    except Exception:
        # pipeline_mode=pl.Buffered(1) not supported by this JAX build; fall
        # back to default (double-buffered) constant blocks.
        outp = build_call(False)(*args)

    return outp[:N, :E].reshape(B, S, E)


# ---------------------------------------------------------------------------
# Full decoder layer (Pallas kernels + trivial JAX glue for reshape/residual)
# ---------------------------------------------------------------------------
def transformer_decoder_layer(tgt, memory, params, *, num_heads, norm_first=False,
                              activation="gelu", eps=1e-5,
                              self_mask=None, cross_mask=None):
    # TODO(synk): incremental-decoding `cache` concat path and (bool) key_padding
    #             masks are not implemented; only additive float attn masks/None.
    output = tgt
    if norm_first:
        output = layer_norm(tgt, params["self_norm"]["gamma"],
                            params["self_norm"]["beta"], eps=eps)
    x_for_cache = output
    kv = output
    attn = multi_head_attention(output, kv, params["self_attn"],
                                num_heads=num_heads, mask=self_mask)
    output = tgt + attn
    if norm_first:
        output = layer_norm(output, params["cross_norm"]["gamma"],
                            params["cross_norm"]["beta"], eps=eps)
    else:
        # NB: the reference module re-uses self_norm here (not cross_norm).
        output = layer_norm(output, params["self_norm"]["gamma"],
                            params["self_norm"]["beta"], eps=eps)
    attn = multi_head_attention(output, memory, params["cross_attn"],
                                num_heads=num_heads, mask=cross_mask)
    output = output + attn
    if not norm_first:
        output = layer_norm(output, params["cross_norm"]["gamma"],
                            params["cross_norm"]["beta"], eps=eps)
    output = fully_connected_network(output, params["mlp"], norm_first=norm_first,
                                     activation=activation, eps=eps)
    return output, x_for_cache


# ---------------------------------------------------------------------------
# Pure-JAX reference (mirrors the PyTorch module, f32 / exact gelu)
# ---------------------------------------------------------------------------
def _ln_ref(x, g, b, eps=1e-5):
    mu = jnp.mean(x, -1, keepdims=True)
    var = jnp.mean(jnp.square(x - mu), -1, keepdims=True)
    return (x - mu) * jax.lax.rsqrt(var + eps) * g + b


def _mha_ref(xq, xkv, p, num_heads):
    B, Sq, E = xq.shape
    Skv = xkv.shape[1]
    Dh = E // num_heads
    q = xq @ p["wq"] + p["bq"]
    k = xkv @ p["wk"] + p["bk"]
    v = xkv @ p["wv"] + p["bv"]
    q = q.reshape(B, Sq, num_heads, Dh).transpose(0, 2, 1, 3)
    k = k.reshape(B, Skv, num_heads, Dh).transpose(0, 2, 1, 3)
    v = v.reshape(B, Skv, num_heads, Dh).transpose(0, 2, 1, 3)
    s = jnp.einsum("bhqd,bhkd->bhqk", q, k) * (1.0 / math.sqrt(Dh))
    a = jax.nn.softmax(s, axis=-1)
    ctx = jnp.einsum("bhqk,bhkd->bhqd", a, v)
    ctx = ctx.transpose(0, 2, 1, 3).reshape(B, Sq, E)
    return ctx @ p["wo"] + p["bo"]


def _ffn_ref(x, p, norm_first, activation, eps=1e-5):
    def ffn(v):
        h = _act_ref(activation, v @ p["w1"] + p["b1"])
        return h @ p["w2"] + p["b2"]
    if norm_first:
        return x + ffn(_ln_ref(x, p["gamma"], p["beta"], eps))
    return _ln_ref(x + ffn(x), p["gamma"], p["beta"], eps)


def _reference_decoder_layer(tgt, memory, params, *, num_heads, norm_first,
                             activation, eps=1e-5):
    output = tgt
    if norm_first:
        output = _ln_ref(tgt, params["self_norm"]["gamma"],
                         params["self_norm"]["beta"], eps)
    x_for_cache = output
    attn = _mha_ref(output, output, params["self_attn"], num_heads)
    output = tgt + attn
    if norm_first:
        output = _ln_ref(output, params["cross_norm"]["gamma"],
                         params["cross_norm"]["beta"], eps)
    else:
        output = _ln_ref(output, params["self_norm"]["gamma"],
                         params["self_norm"]["beta"], eps)
    attn = _mha_ref(output, memory, params["cross_attn"], num_heads)
    output = output + attn
    if not norm_first:
        output = _ln_ref(output, params["cross_norm"]["gamma"],
                         params["cross_norm"]["beta"], eps)
    output = _ffn_ref(output, params["mlp"], norm_first, activation, eps)
    return output, x_for_cache


# ---------------------------------------------------------------------------
# Deterministic parameter init (shapes mirror nn.Linear / nn.LayerNorm)
# ---------------------------------------------------------------------------
def init_decoder_params(key, embed_dim, ffn_dim):
    E, F = embed_dim, ffn_dim

    def dense(k, fan_in, shape):
        return jax.random.normal(k, shape, jnp.float32) / jnp.sqrt(fan_in)

    def attn_params(kk):
        k = jax.random.split(kk, 8)
        return {
            "wq": dense(k[0], E, (E, E)), "bq": 0.02 * jax.random.normal(k[1], (E,)),
            "wk": dense(k[2], E, (E, E)), "bk": 0.02 * jax.random.normal(k[3], (E,)),
            "wv": dense(k[4], E, (E, E)), "bv": 0.02 * jax.random.normal(k[5], (E,)),
            "wo": dense(k[6], E, (E, E)), "bo": 0.02 * jax.random.normal(k[7], (E,)),
        }

    ks = jax.random.split(key, 12)
    return {
        "self_norm": {"gamma": 1.0 + 0.1 * jax.random.normal(ks[0], (E,)),
                      "beta": 0.1 * jax.random.normal(ks[1], (E,))},
        "cross_norm": {"gamma": 1.0 + 0.1 * jax.random.normal(ks[2], (E,)),
                       "beta": 0.1 * jax.random.normal(ks[3], (E,))},
        "self_attn": attn_params(ks[4]),
        "cross_attn": attn_params(ks[5]),
        "mlp": {
            "gamma": 1.0 + 0.1 * jax.random.normal(ks[6], (E,)),
            "beta": 0.1 * jax.random.normal(ks[7], (E,)),
            "w1": dense(ks[8], E, (E, F)),
            "b1": 0.02 * jax.random.normal(ks[9], (F,)),
            "w2": dense(ks[10], F, (F, E)),
            "b2": 0.02 * jax.random.normal(ks[11], (E,)),
        },
    }


if __name__ == "__main__":
    B, S_TGT, S_MEM, E, H, FFN_DIM = 2, 8, 12, 32, 4, 64

    root = jax.random.PRNGKey(0)
    k_tgt, k_mem, k_par = jax.random.split(root, 3)
    tgt = jax.random.normal(k_tgt, (B, S_TGT, E), jnp.float32)
    memory = jax.random.normal(k_mem, (B, S_MEM, E), jnp.float32)
    params = init_decoder_params(k_par, E, FFN_DIM)

    # Default module config (norm_first=False, gelu) plus the pre-norm/relu path.
    for norm_first, activation in [(False, "gelu"), (True, "relu")]:
        out, cache = transformer_decoder_layer(
            tgt, memory, params, num_heads=H,
            norm_first=norm_first, activation=activation)
        out = jax.block_until_ready(out)
        cache = jax.block_until_ready(cache)

        ref_out, ref_cache = _reference_decoder_layer(
            tgt, memory, params, num_heads=H,
            norm_first=norm_first, activation=activation)

        assert out.shape == (B, S_TGT, E)
        assert cache.shape == (B, S_TGT, E)
        err = float(jnp.max(jnp.abs(out - ref_out)))
        cerr = float(jnp.max(jnp.abs(cache - ref_cache)))
        # bf16 MXU operands + tanh-approx gelu in the FFN -> loose-ish tolerance.
        assert err < 5e-2, f"output mismatch (norm_first={norm_first}): {err}"
        assert cerr < 1e-4, f"cache mismatch (norm_first={norm_first}): {cerr}"

    print("KERNEL_OK")
</pallas_src>

<mosaic_0001>
module attributes {stable_mosaic.version = 11 : i64} {
  func.func @_linear_kernel(%arg0: i32, %arg1: memref<16x32xf32, #tpu.memory_space<vmem>>, %arg2: memref<32x32xf32, #tpu.memory_space<vmem>>, %arg3: memref<1x32xf32, #tpu.memory_space<vmem>>, %arg4: memref<16x32xf32, #tpu.memory_space<vmem>>) attributes {dimension_semantics = [#tpu.dimension_semantics<parallel>], iteration_bounds = array<i64: 1>, scalar_prefetch = 0 : i64, scratch_operands = 0 : i64, tpu.core_type = #tpu.core_type<tc>, window_params = [{transform_indices = @transform_0, window_bounds = array<i64: 16, 32>}, {pipeline_mode = #tpu.pipeline_mode<synchronous>, transform_indices = @transform_1, window_bounds = array<i64: 32, 32>}, {pipeline_mode = #tpu.pipeline_mode<synchronous>, transform_indices = @transform_2, window_bounds = array<i64: 1, 32>}, {transform_indices = @transform_3, window_bounds = array<i64: 16, 32>}]} {
    %c0 = arith.constant 0 : index
    %c0_0 = arith.constant 0 : index
    %0 = vector.load %arg1[%c0, %c0_0] : memref<16x32xf32, #tpu.memory_space<vmem>>, vector<16x32xf32>
    %c0_1 = arith.constant 0 : index
    %c0_2 = arith.constant 0 : index
    %1 = vector.load %arg2[%c0_1, %c0_2] : memref<32x32xf32, #tpu.memory_space<vmem>>, vector<32x32xf32>
    %cst = arith.constant dense<0.000000e+00> : vector<16x32xf32>
    %2 = tpu.matmul %0, %1, %cst {dimension_numbers = #tpu.dot_dimension_numbers<[1], [0], [0], [1], [0, 0, 1, 1], [], []>} : vector<16x32xf32>, vector<32x32xf32>, vector<16x32xf32> -> vector<16x32xf32>
    %c0_3 = arith.constant 0 : index
    %c0_4 = arith.constant 0 : index
    %3 = vector.load %arg3[%c0_3, %c0_4] : memref<1x32xf32, #tpu.memory_space<vmem>>, vector<1x32xf32>
    %4 = vector.broadcast %3 : vector<1x32xf32> to vector<16x32xf32>
    %5 = arith.addf %2, %4 : vector<16x32xf32>
    %c0_5 = arith.constant 0 : index
    %c0_6 = arith.constant 0 : index
    %6 = vector.load %arg4[%c0_5, %c0_6] : memref<16x32xf32, #tpu.memory_space<vmem>>, vector<16x32xf32>
    tpu.vector_store %arg4[%c0_5, %c0_6], %5 {strides = array<i32>} : memref<16x32xf32, #tpu.memory_space<vmem>>, vector<16x32xf32>,
    return
  }
  func.func @transform_0(%arg0: i32) -> (i32, i32) {
    %c0_i32 = arith.constant 0 : i32
    %c0_i32_0 = arith.constant 0 : i32
    return %arg0, %c0_i32 : i32, i32
  }
  func.func @transform_1(%arg0: i32) -> (i32, i32) {
    %c0_i32 = arith.constant 0 : i32
    %c0_i32_0 = arith.constant 0 : i32
    %c0_i32_1 = arith.constant 0 : i32
    return %c0_i32, %c0_i32_0 : i32, i32
  }
  func.func @transform_2(%arg0: i32) -> (i32, i32) {
    %c0_i32 = arith.constant 0 : i32
    %c0_i32_0 = arith.constant 0 : i32
    %c0_i32_1 = arith.constant 0 : i32
    return %c0_i32, %c0_i32_0 : i32, i32
  }
  func.func @transform_3(%arg0: i32) -> (i32, i32) {
    %c0_i32 = arith.constant 0 : i32
    %c0_i32_0 = arith.constant 0 : i32
    return %arg0, %c0_i32 : i32, i32
  }
}

</mosaic_0001>

<bundles_post_ra>
// kernel: tpu_custom_call.1
= control target key start
LH: loop header
LB: loop body
LE: loop exit
PB: predicated region body
PF: predicated region fallthrough
CT: control target
= control target key end

     0   :  { %8 = vsyncpa [#allocation3], 0  ;;  %s249_s0 = inlined_call_operand.hbm [shape: f32[16,32], index: 0, kind: input, shape index: {}]   ;;  %s250_s1 = inlined_call_operand.hbm [shape: f32[32,32], index: 1, kind: input, shape index: {}]   ;;  %s251_s2 = inlined_call_operand.vmem [shape: f32[1,32], index: 2, kind: input, shape index: {}]   ;;  %s252_s3 = inlined_call_operand.hbm [shape: f32[16,32], index: 3, kind: output, shape index: {}]  }
   0x1   :  { %9 = vsyncpa [#allocation6], 0 }
   0x2   :  { %10 = vsyncpa [#allocation4], 0  ;;  %s15_s14 = sshll.u32 %s249_s0, 4  ;;  %s199_s15 = smov [#allocation2]   ;;  %s16_s14 = int_to_ptr.hbm [resolvable:$true] %s15_s14 }
   0x3   :  { %s17_s16 = sshll.u32 %s199_s15, 4  ;;  %s28_s19 = sshll.u32 %s250_s1, 4  ;;  %s18_s16 = int_to_ptr.vmem [resolvable:$true] %s17_s16  ;;  %s29_s19 = int_to_ptr.hbm [resolvable:$true] %s28_s19 }
   0x4   :  { %s200_s20 = smov 128   ;;  %s201_s21 = smov 8  }
   0x5   :  { %23 = dma.hbm_to_vmem [thread:$0]  %s16_s14, 256, %s18_s16, [#allocation3], %s200_s20, %s200_s20, %s201_s21  }
   0x6   :  { %s202_s22 = smov [#allocation5]  }
   0x7   :  { %s30_s23 = sshll.u32 %s202_s22, 4  ;;  %s31_s23 = int_to_ptr.vmem [resolvable:$true] %s30_s23 }
   0x8   :  { %36 = dma.hbm_to_vmem [thread:$0]  %s29_s19, 512, %s31_s23, [#allocation6], %s200_s20, %s200_s20, %s201_s21  }
   0x9   :  { %193 = dma.done.wait [#allocation3], 256  }
   0xa   :  { %194 = vsyncadd [#allocation3], 4294967040 }
   0xb   :  { %195 = dma.done.wait [#allocation6], 512  }
   0xc   :  { %196 = vsyncadd [#allocation6], 4294966784  ;;  %v52_v0 = vld [vmem:[#allocation5 + $0x18] sm:$0xff]  ;;  %v51_v1 = vld [vmem:[#allocation5 + $0x10] sm:$0xff]  ;;  %vm57_vm0 = vcmask 261120   ;;  %s203_s24 = smov [#allocation7]  }
   0xd   :  { %76 = vmatpush.msra.mxu0 %v52_v0  ;;  %111 = vmatpush.msra.mxu1 %v52_v0  ;;  %v50_v2 = vld [vmem:[#allocation5 + $0x8] sm:$0xff]  ;;  %v49_v3 = vld [vmem:[#allocation5] sm:$0xff]  ;;  %v47_v4 = vld [vmem:[#allocation2] sm:$0xff]  ;;  %s93_s25 = sshll.u32 %s203_s24, 4  ;;  %s95_s28 = sshll.u32 %s252_s3, 4  ;;  %s94_s25 = int_to_ptr.vmem [resolvable:$true] %s93_s25  ;;  %s96_s28 = int_to_ptr.hbm [resolvable:$true] %s95_s28 }
   0xe   :  { %v48_v5 = vld [vmem:[#allocation2 + $0x8] sm:$0xff]  ;;  %v120_v6 = vld [vmem:[%s251_s2] ss:$0 sm:$0xff] }
   0xf   :  { %77 = vmatpush.msra.mxu0 %v51_v1  ;;  %112 = vmatpush.msra.mxu1 %v51_v1 }
  0x11   :  { %78 = vmatpush.msra.mxu0 %v50_v2  ;;  %113 = vmatpush.msra.mxu1 %v50_v2 }
  0x13   :  { %79 = vmatpush.msra.mxu0 %v49_v3  ;;  %114 = vmatpush.msra.mxu1 %v49_v3 }
  0x14   :  { %109 = vmatmul.msk.f32.vlgmr.msra.gmra.mxu0 %vm57_vm0, %v47_v4  ;;  %110 = vmatmul.msk.f32.vlgmr.msra.gmra.mxu1 %vm57_vm0, %v48_v5 }
  0x91   :  { %v81_v7 = vpop.f32.mrf.mxu0  ;;  %v84_v8 = vpop.f32.mrf.mxu1 }
  0x92   :  { %v82_v9 = vadd.f32 %v120_v6, %v81_v7  ;;  %v85_v10 = vadd.f32 %v120_v6, %v84_v8 }
  0x94   :  { %87 = vst.msk [vmem:[#allocation7] sm:$0xff] %vm57_vm0, %v82_v9 }
  0x95   :  { %88 = vst.msk [vmem:[#allocation7 + $0x8] sm:$0xff] %vm57_vm0, %v85_v10 }
  0x96   :  { %101 = dma.vmem_to_hbm [thread:$0]  %s94_s25, 256, %s96_s28, [#allocation4], %s200_s20, %s200_s20, %s201_s21  }
  0x97   :  { %197 = dma.done.wait [#allocation4], 256  }
  0x98   :  { %198 = vsyncadd [#allocation4], 4294967040 }
  0x99   :  { %106 = vsyncpa [#allocation3], 1 }
  0x9a   :  { %107 = vsyncpa [#allocation6], 1 }
  0x9b   :  { %108 = vsyncpa [#allocation4], 1 }

</bundles_post_ra>
